<compile_context>
chip_gen: v5e
topology: v5e:2x2
jax: 0.10.0
libtpu: 0.0.40
codegen_flags: <defaults>
</compile_context>

<pallas_src>
import math
from functools import partial

import jax
import jax.numpy as jnp
from jax.experimental import pallas as pl
from jax.experimental.pallas import tpu as pltpu


def _round_up(v, m):
    return ((v + m - 1) // m) * m


# --------------------------------------------------------------------------- #
# Kernel body
# --------------------------------------------------------------------------- #
def _bdq_kernel(x_ref, w1_ref, b1_ref, w2_ref, b2_ref, whf_ref, bhf_ref, out_ref):
    # Trunk MLP: two MXU matmuls (f32 accumulation) + VPU bias/relu in f32.
    x = x_ref[...]
    h1 = jnp.dot(x, w1_ref[...], preferred_element_type=jnp.float32) + b1_ref[...]
    h1 = jnp.maximum(h1, 0.0)
    h2 = jnp.dot(h1.astype(w2_ref.dtype), w2_ref[...],
                 preferred_element_type=jnp.float32) + b2_ref[...]
    h2 = jnp.maximum(h2, 0.0)
    # Fused, pre-centered advantage heads: one lane-dense (tb, 4n) @ (4n, ac_dim*n)
    # matmul; mean-centering is already folded into whf/bhf, so no XLU reduction
    # and no masked stores (output columns are padded to a multiple of 128).
    q = jnp.dot(h2.astype(whf_ref.dtype), whf_ref[...],
                preferred_element_type=jnp.float32) + bhf_ref[...]
    out_ref[...] = q.astype(out_ref.dtype)


# --------------------------------------------------------------------------- #
# One-time parameter preparation (hoisted out of the forward path)
# --------------------------------------------------------------------------- #
def prepare_params(params, *, compute_dtype=jnp.float32):
    """Fold mean-centering into the head weights, fuse all heads into one
    lane-dense matmul, zero-pad feature dims to multiples of 128, and cast the
    matmul operands to compute_dtype (biases stay f32).  Call once per set of
    parameters; the result is what branching_dq_forward consumes."""
    w1, b1, w2, b2, wh, bh = params
    obs, h1 = w1.shape
    ac_dim, h2, n = wh.shape

    # Mean-centering is linear:  adv - mean(adv, -1) == adv @ (I_n - 1/n * ones)
    center = jnp.eye(n, dtype=jnp.float32) - jnp.full((n, n), 1.0 / n, jnp.float32)
    wh_c = jnp.einsum("ahn,nm->ahm", wh, center)
    bh_c = bh @ center

    # Fuse heads: columns [a*n:(a+1)*n] of the fused matrix belong to head a.
    wh_f = jnp.transpose(wh_c, (1, 0, 2)).reshape(h2, ac_dim * n)
    bh_f = bh_c.reshape(1, ac_dim * n)

    # Lane-dense zero padding (multiples of 128).  Padded hidden lanes have zero
    # weight columns and zero bias -> relu(0)=0 -> contribute nothing downstream.
    h1p = _round_up(h1, 128)
    h2p = _round_up(h2, 128)
    ocp = _round_up(ac_dim * n, 128)

    w1 = jnp.pad(w1, ((0, 0), (0, h1p - h1)))
    b1 = jnp.pad(b1, ((0, 0), (0, h1p - h1)))
    w2 = jnp.pad(w2, ((0, h1p - h1), (0, h2p - h2)))
    b2 = jnp.pad(b2, ((0, 0), (0, h2p - h2)))
    wh_f = jnp.pad(wh_f, ((0, h2p - h2), (0, ocp - ac_dim * n)))
    bh_f = jnp.pad(bh_f, ((0, 0), (0, ocp - ac_dim * n)))

    # Only the MXU operands take compute_dtype (e.g. bf16); biases/elementwise
    # stay f32 so v5e's f32-only VPU does no extra cast work.
    w1 = w1.astype(compute_dtype)
    w2 = w2.astype(compute_dtype)
    wh_f = wh_f.astype(compute_dtype)
    b1 = b1.astype(jnp.float32)
    b2 = b2.astype(jnp.float32)
    bh_f = bh_f.astype(jnp.float32)

    return (w1, b1, w2, b2, wh_f, bh_f)


# --------------------------------------------------------------------------- #
# Jitted forward wrapper
# --------------------------------------------------------------------------- #
@partial(jax.jit, static_argnames=("ac_dim", "n", "block_b"))
def branching_dq_forward(x, prepared, *, ac_dim, n, block_b=1024):
    """x: (B, obs). prepared: output of prepare_params. Returns (B, ac_dim, n) f32."""
    w1, b1, w2, b2, wh_f, bh_f = prepared
    B, obs = x.shape
    out_cols = ac_dim * n
    ocp = wh_f.shape[1]

    # Matmul-operand dtype follows the prepared weights (f32 or bf16).
    x = x.astype(w1.dtype)

    # Batch tiling: big tiles (default 1024) amortize the ~600-cycle per-step
    # overhead; when B <= 2*block_b we still emit >=2 tiles so the "parallel"
    # axis shards across both TensorCores on v7x.
    if B <= 8:
        tb = 8
    elif B <= 2 * block_b:
        tb = _round_up(pl.cdiv(B, 2), 8)
    else:
        tb = block_b
    b_pad = _round_up(B, tb)
    if b_pad != B:
        # TODO(synk): a separate ragged-tail pallas_call would avoid this full
        # pad copy; with block_b=1024 and typical power-of-two RL batches this
        # branch is rarely taken for large B.
        x = jnp.pad(x, ((0, b_pad - B), (0, 0)))
    grid = (b_pad // tb,)

    weights = (w1, b1, w2, b2, wh_f, bh_f)

    def const_spec(arr):
        zeros = (0,) * arr.ndim
        return pl.BlockSpec(arr.shape, lambda i, _z=zeros: _z)  # VMEM-resident

    in_specs = [pl.BlockSpec((tb, obs), lambda i: (i, 0))]
    in_specs += [const_spec(w) for w in weights]
    out_specs = pl.BlockSpec((tb, ocp), lambda i: (i, 0))  # lane-dense (ocp % 128 == 0)

    h1p = w1.shape[1]
    h2p = w2.shape[1]
    flops = 2 * b_pad * (obs * h1p + h1p * h2p + h2p * ocp)
    bytes_accessed = (int(x.size) * x.dtype.itemsize
                      + sum(int(w.size) * w.dtype.itemsize for w in weights)
                      + b_pad * ocp * 4)

    out = pl.pallas_call(
        _bdq_kernel,
        out_shape=jax.ShapeDtypeStruct((b_pad, ocp), jnp.float32),
        grid=grid,
        in_specs=in_specs,
        out_specs=out_specs,
        compiler_params=pltpu.CompilerParams(
            dimension_semantics=("parallel",),  # megacore sharding of batch tiles
        ),
        cost_estimate=pl.CostEstimate(
            flops=int(flops), transcendentals=0, bytes_accessed=int(bytes_accessed)),
    )(x, *weights)

    # Lane-dense slab -> logical view; padded rows/columns dropped (fused under jit).
    return out[:B, :out_cols].reshape(B, ac_dim, n)


# --------------------------------------------------------------------------- #
# Init + pure-JAX reference (PyTorch-equivalent semantics)
# --------------------------------------------------------------------------- #
def init_params(key, obs, ac_dim, n):
    """Xavier-uniform weights (torch.nn.init.xavier_uniform_), PyTorch-default
    uniform(-1/sqrt(fan_in), 1/sqrt(fan_in)) biases.  Weights stored as
    (in_features, out_features) so the kernel computes x @ W + b."""
    def xavier(k, fan_in, fan_out):
        bound = math.sqrt(6.0 / (fan_in + fan_out))
        return jax.random.uniform(k, (fan_in, fan_out), jnp.float32, -bound, bound)

    def bias(k, fan_in, fan_out):
        bound = 1.0 / math.sqrt(fan_in)
        return jax.random.uniform(k, (1, fan_out), jnp.float32, -bound, bound)

    keys = jax.random.split(key, 6)
    h1, h2 = 8 * n, 4 * n
    w1 = xavier(keys[0], obs, h1)
    b1 = bias(keys[1], obs, h1)
    w2 = xavier(keys[2], h1, h2)
    b2 = bias(keys[3], h1, h2)
    bound_w = math.sqrt(6.0 / (h2 + n))
    wh = jax.random.uniform(keys[4], (ac_dim, h2, n), jnp.float32, -bound_w, bound_w)
    bound_b = 1.0 / math.sqrt(h2)
    bh = jax.random.uniform(keys[5], (ac_dim, n), jnp.float32, -bound_b, bound_b)
    return (w1, b1, w2, b2, wh, bh)


def reference_forward(x, params):
    """Pure-JAX reference of the PyTorch forward (explicit mean-centering)."""
    w1, b1, w2, b2, wh, bh = params
    h1 = jnp.maximum(x @ w1 + b1, 0.0)
    h2 = jnp.maximum(h1 @ w2 + b2, 0.0)
    advs = jnp.einsum("bh,ahn->ban", h2, wh) + bh[None, :, :]
    return advs - advs.mean(axis=2, keepdims=True)


if __name__ == "__main__":
    # Small shapes consistent with the module: obs=32, n=16 (hidden 128/64), ac_dim=4, batch=8
    obs, ac_dim, n, batch = 32, 4, 16, 8

    key = jax.random.PRNGKey(0)
    pkey, xkey = jax.random.split(key)
    params = init_params(pkey, obs, ac_dim, n)
    x = jax.random.normal(xkey, (batch, obs), jnp.float32)
    q_ref = reference_forward(x, params)

    # Exact (f32) path: matches PyTorch semantics to f32 rounding.
    prep_f32 = prepare_params(params, compute_dtype=jnp.float32)
    q = jax.block_until_ready(branching_dq_forward(x, prep_f32, ac_dim=ac_dim, n=n))
    assert q.shape == (batch, ac_dim, n)
    assert jnp.allclose(q, q_ref, atol=1e-5, rtol=1e-5), "f32 kernel mismatch vs. JAX reference"

    # bf16-operand path: MXU native rate + halved HBM streams; f32 accumulation.
    prep_bf16 = prepare_params(params, compute_dtype=jnp.bfloat16)
    q16 = jax.block_until_ready(branching_dq_forward(x, prep_bf16, ac_dim=ac_dim, n=n))
    assert q16.shape == (batch, ac_dim, n)
    assert float(jnp.max(jnp.abs(q16 - q_ref))) < 5e-2, "bf16 kernel drift too large"

    print("KERNEL_OK")
</pallas_src>

<mosaic_0001>
module attributes {stable_mosaic.version = 11 : i64} {
  func.func @_bdq_kernel(%arg0: i32, %arg1: memref<8x32xf32, #tpu.memory_space<vmem>>, %arg2: memref<32x128xf32, #tpu.memory_space<vmem>>, %arg3: memref<1x128xf32, #tpu.memory_space<vmem>>, %arg4: memref<128x128xf32, #tpu.memory_space<vmem>>, %arg5: memref<1x128xf32, #tpu.memory_space<vmem>>, %arg6: memref<128x128xf32, #tpu.memory_space<vmem>>, %arg7: memref<1x128xf32, #tpu.memory_space<vmem>>, %arg8: memref<8x128xf32, #tpu.memory_space<vmem>>) attributes {dimension_semantics = [#tpu.dimension_semantics<parallel>], iteration_bounds = array<i64: 1>, scalar_prefetch = 0 : i64, scratch_operands = 0 : i64, tpu.core_type = #tpu.core_type<tc>, window_params = [{transform_indices = @transform_0, window_bounds = array<i64: 8, 32>}, {pipeline_mode = #tpu.pipeline_mode<synchronous>, transform_indices = @transform_1, window_bounds = array<i64: 32, 128>}, {pipeline_mode = #tpu.pipeline_mode<synchronous>, transform_indices = @transform_2, window_bounds = array<i64: 1, 128>}, {pipeline_mode = #tpu.pipeline_mode<synchronous>, transform_indices = @transform_3, window_bounds = array<i64: 128, 128>}, {pipeline_mode = #tpu.pipeline_mode<synchronous>, transform_indices = @transform_4, window_bounds = array<i64: 1, 128>}, {pipeline_mode = #tpu.pipeline_mode<synchronous>, transform_indices = @transform_5, window_bounds = array<i64: 128, 128>}, {pipeline_mode = #tpu.pipeline_mode<synchronous>, transform_indices = @transform_6, window_bounds = array<i64: 1, 128>}, {transform_indices = @transform_7, window_bounds = array<i64: 8, 128>}]} {
    %c0 = arith.constant 0 : index
    %c0_0 = arith.constant 0 : index
    %0 = vector.load %arg1[%c0, %c0_0] : memref<8x32xf32, #tpu.memory_space<vmem>>, vector<8x32xf32>
    %c0_1 = arith.constant 0 : index
    %c0_2 = arith.constant 0 : index
    %1 = vector.load %arg2[%c0_1, %c0_2] : memref<32x128xf32, #tpu.memory_space<vmem>>, vector<32x128xf32>
    %cst = arith.constant dense<0.000000e+00> : vector<8x128xf32>
    %2 = tpu.matmul %0, %1, %cst {dimension_numbers = #tpu.dot_dimension_numbers<[1], [0], [0], [1], [0, 0, 1, 1], [], []>} : vector<8x32xf32>, vector<32x128xf32>, vector<8x128xf32> -> vector<8x128xf32>
    %c0_3 = arith.constant 0 : index
    %c0_4 = arith.constant 0 : index
    %3 = vector.load %arg3[%c0_3, %c0_4] : memref<1x128xf32, #tpu.memory_space<vmem>>, vector<1x128xf32>
    %4 = vector.broadcast %3 : vector<1x128xf32> to vector<8x128xf32>
    %5 = arith.addf %2, %4 : vector<8x128xf32>
    %cst_5 = arith.constant 0.000000e+00 : f32
    %6 = vector.broadcast %cst_5 : f32 to vector<8x128xf32>
    %7 = arith.maximumf %5, %6 : vector<8x128xf32>
    %c0_6 = arith.constant 0 : index
    %c0_7 = arith.constant 0 : index
    %8 = vector.load %arg4[%c0_6, %c0_7] : memref<128x128xf32, #tpu.memory_space<vmem>>, vector<128x128xf32>
    %cst_8 = arith.constant dense<0.000000e+00> : vector<8x128xf32>
    %9 = tpu.matmul %7, %8, %cst_8 {dimension_numbers = #tpu.dot_dimension_numbers<[1], [0], [0], [1], [0, 0, 1, 1], [], []>} : vector<8x128xf32>, vector<128x128xf32>, vector<8x128xf32> -> vector<8x128xf32>
    %c0_9 = arith.constant 0 : index
    %c0_10 = arith.constant 0 : index
    %10 = vector.load %arg5[%c0_9, %c0_10] : memref<1x128xf32, #tpu.memory_space<vmem>>, vector<1x128xf32>
    %11 = vector.broadcast %10 : vector<1x128xf32> to vector<8x128xf32>
    %12 = arith.addf %9, %11 : vector<8x128xf32>
    %cst_11 = arith.constant 0.000000e+00 : f32
    %13 = vector.broadcast %cst_11 : f32 to vector<8x128xf32>
    %14 = arith.maximumf %12, %13 : vector<8x128xf32>
    %c0_12 = arith.constant 0 : index
    %c0_13 = arith.constant 0 : index
    %15 = vector.load %arg6[%c0_12, %c0_13] : memref<128x128xf32, #tpu.memory_space<vmem>>, vector<128x128xf32>
    %cst_14 = arith.constant dense<0.000000e+00> : vector<8x128xf32>
    %16 = tpu.matmul %14, %15, %cst_14 {dimension_numbers = #tpu.dot_dimension_numbers<[1], [0], [0], [1], [0, 0, 1, 1], [], []>} : vector<8x128xf32>, vector<128x128xf32>, vector<8x128xf32> -> vector<8x128xf32>
    %c0_15 = arith.constant 0 : index
    %c0_16 = arith.constant 0 : index
    %17 = vector.load %arg7[%c0_15, %c0_16] : memref<1x128xf32, #tpu.memory_space<vmem>>, vector<1x128xf32>
    %18 = vector.broadcast %17 : vector<1x128xf32> to vector<8x128xf32>
    %19 = arith.addf %16, %18 : vector<8x128xf32>
    %c0_17 = arith.constant 0 : index
    %c0_18 = arith.constant 0 : index
    %20 = vector.load %arg8[%c0_17, %c0_18] : memref<8x128xf32, #tpu.memory_space<vmem>>, vector<8x128xf32>
    tpu.vector_store %arg8[%c0_17, %c0_18], %19 {strides = array<i32>} : memref<8x128xf32, #tpu.memory_space<vmem>>, vector<8x128xf32>,
    return
  }
  func.func @transform_0(%arg0: i32) -> (i32, i32) {
    %c0_i32 = arith.constant 0 : i32
    %c0_i32_0 = arith.constant 0 : i32
    return %arg0, %c0_i32 : i32, i32
  }
  func.func @transform_1(%arg0: i32) -> (i32, i32) {
    %c0_i32 = arith.constant 0 : i32
    %c0_i32_0 = arith.constant 0 : i32
    %c0_i32_1 = arith.constant 0 : i32
    return %c0_i32, %c0_i32_0 : i32, i32
  }
  func.func @transform_2(%arg0: i32) -> (i32, i32) {
    %c0_i32 = arith.constant 0 : i32
    %c0_i32_0 = arith.constant 0 : i32
    %c0_i32_1 = arith.constant 0 : i32
    return %c0_i32, %c0_i32_0 : i32, i32
  }
  func.func @transform_3(%arg0: i32) -> (i32, i32) {
    %c0_i32 = arith.constant 0 : i32
    %c0_i32_0 = arith.constant 0 : i32
    %c0_i32_1 = arith.constant 0 : i32
    return %c0_i32, %c0_i32_0 : i32, i32
  }
  func.func @transform_4(%arg0: i32) -> (i32, i32) {
    %c0_i32 = arith.constant 0 : i32
    %c0_i32_0 = arith.constant 0 : i32
    %c0_i32_1 = arith.constant 0 : i32
    return %c0_i32, %c0_i32_0 : i32, i32
  }
  func.func @transform_5(%arg0: i32) -> (i32, i32) {
    %c0_i32 = arith.constant 0 : i32
    %c0_i32_0 = arith.constant 0 : i32
    %c0_i32_1 = arith.constant 0 : i32
    return %c0_i32, %c0_i32_0 : i32, i32
  }
  func.func @transform_6(%arg0: i32) -> (i32, i32) {
    %c0_i32 = arith.constant 0 : i32
    %c0_i32_0 = arith.constant 0 : i32
    %c0_i32_1 = arith.constant 0 : i32
    return %c0_i32, %c0_i32_0 : i32, i32
  }
  func.func @transform_7(%arg0: i32) -> (i32, i32) {
    %c0_i32 = arith.constant 0 : i32
    %c0_i32_0 = arith.constant 0 : i32
    return %arg0, %c0_i32 : i32, i32
  }
}

</mosaic_0001>

<bundles_post_ra>
// kernel: branching_dq_forward.1
= control target key start
LH: loop header
LB: loop body
LE: loop exit
PB: predicated region body
PF: predicated region fallthrough
CT: control target
= control target key end

     0   :  { %12 = vsyncpa [#allocation3], 0  ;;  %s392_s0 = inlined_call_operand.hbm [shape: f32[8,32], index: 0, kind: input, shape index: {}]   ;;  %s393_s1 = inlined_call_operand.hbm [shape: f32[32,128], index: 1, kind: input, shape index: {}]   ;;  %s394_s2 = inlined_call_operand.vmem [shape: f32[1,128], index: 2, kind: input, shape index: {}]   ;;  %s395_s3 = inlined_call_operand.hbm [shape: f32[128,128], index: 3, kind: input, shape index: {}]   ;;  %s396_s4 = inlined_call_operand.vmem [shape: f32[1,128], index: 4, kind: input, shape index: {}]   ;;  %s397_s5 = inlined_call_operand.hbm [shape: f32[128,128], index: 5, kind: input, shape index: {}]   ;;  %s398_s6 = inlined_call_operand.vmem [shape: f32[1,128], index: 6, kind: input, shape index: {}]   ;;  %s399_s7 = inlined_call_operand.vmem [shape: f32[8,128], index: 7, kind: output, shape index: {}]  }
   0x1   :  { %13 = vsyncpa [#allocation5], 0  ;;  %s30_s26 = sshll.u32 %s393_s1, 4  ;;  %s31_s26 = int_to_ptr.hbm [resolvable:$true] %s30_s26 }
   0x2   :  { %14 = vsyncpa [#allocation8], 0  ;;  %s322_s27 = smov [#allocation4]   ;;  %s20_s8 = sshll.u32 %s392_s0, 4  ;;  %s21_s8 = int_to_ptr.hbm [resolvable:$true] %s20_s8 }
   0x3   :  { %s32_s28 = sshll.u32 %s322_s27, 4  ;;  %s323_s9 = smov 128   ;;  %s33_s28 = int_to_ptr.vmem [resolvable:$true] %s32_s28 }
   0x4   :  { %s324_s10 = smov 8   ;;  %s325_s11 = smov [#allocation2]  }
   0x5   :  { %38 = dma.hbm_to_vmem [thread:$0]  %s31_s26, 512, %s33_s28, [#allocation5], %s323_s9, %s323_s9, %s324_s10  }
   0x6   :  { %s22_s12 = sshll.u32 %s325_s11, 4  ;;  %s45_s15 = sshll.u32 %s395_s3, 4  ;;  %s23_s12 = int_to_ptr.vmem [resolvable:$true] %s22_s12  ;;  %s46_s15 = int_to_ptr.hbm [resolvable:$true] %s45_s15 }
   0x7   :  { %25 = dma.hbm_to_vmem [thread:$0]  %s21_s8, 128, %s23_s12, [#allocation3]  }
   0x8   :  { %s60_s17 = sshll.u32 %s397_s5, 4  ;;  %s326_s18 = smov [#allocation6]   ;;  %s61_s17 = int_to_ptr.hbm [resolvable:$true] %s60_s17 }
   0x9   :  { %s47_s19 = sshll.u32 %s326_s18, 4  ;;  %s327_s0 = smov [#allocation7]   ;;  %s48_s19 = int_to_ptr.vmem [resolvable:$true] %s47_s19 }
   0xa   :  { %53 = dma.hbm_to_vmem [thread:$0]  %s46_s15, 2048, %s48_s19, [#allocation5], %s323_s9, %s323_s9, %s324_s10  }
   0xb   :  { %s62_s20 = sshll.u32 %s327_s0, 4  ;;  %s63_s20 = int_to_ptr.vmem [resolvable:$true] %s62_s20 }
   0xc   :  { %68 = dma.hbm_to_vmem [thread:$0]  %s61_s17, 2048, %s63_s20, [#allocation8], %s323_s9, %s323_s9, %s324_s10  }
   0xd   :  { %316 = dma.done.wait [#allocation3], 128  }
   0xe   :  { %317 = vsyncadd [#allocation3], 4294967168 }
   0xf   :  { %318 = dma.done.wait [#allocation5], 2560  }
  0x10   :  { %319 = vsyncadd [#allocation5], 4294964736 }
  0x11   :  { %320 = dma.done.wait [#allocation8], 2048  }
  0x12   :  { %321 = vsyncadd [#allocation8], 4294965248  ;;  %v91_v0 = vld [vmem:[#allocation4 + $0x18] sm:$0xff]  ;;  %v90_v1 = vld [vmem:[#allocation4 + $0x10] sm:$0xff]  ;;  %vm96_vm0 = vcmask 261120  }
  0x13   :  { %112 = vmatpush.msra.mxu0 %v91_v0  ;;  %v136_v2 = vld [vmem:[#allocation6 + $0x78] sm:$0xff]  ;;  %v89_v3 = vld [vmem:[#allocation4 + $0x8] sm:$0xff]  ;;  %v135_v4 = vld [vmem:[#allocation6 + $0x70] sm:$0xff] }
  0x14   :  { %141 = vmatpush.msra.mxu1 %v136_v2  ;;  %v134_v5 = vld [vmem:[#allocation6 + $0x68] sm:$0xff]  ;;  %v88_v6 = vld [vmem:[#allocation4] sm:$0xff]  ;;  %v87_v7 = vld [vmem:[#allocation2] sm:$0xff] }
  0x15   :  { %113 = vmatpush.msra.mxu0 %v90_v1  ;;  %v133_v8 = vld [vmem:[#allocation6 + $0x60] sm:$0xff]  ;;  %v132_v9 = vld [vmem:[#allocation6 + $0x58] sm:$0xff]  ;;  %v131_v10 = vld [vmem:[#allocation6 + $0x50] sm:$0xff] }
  0x16   :  { %142 = vmatpush.msra.mxu1 %v135_v4  ;;  %v130_v11 = vld [vmem:[#allocation6 + $0x48] sm:$0xff]  ;;  %v129_v12 = vld [vmem:[#allocation6 + $0x40] sm:$0xff]  ;;  %v128_v13 = vld [vmem:[#allocation6 + $0x38] sm:$0xff] }
  0x17   :  { %114 = vmatpush.msra.mxu0 %v89_v3  ;;  %v127_v14 = vld [vmem:[#allocation6 + $0x30] sm:$0xff]  ;;  %v126_v15 = vld [vmem:[#allocation6 + $0x28] sm:$0xff]  ;;  %v125_v16 = vld [vmem:[#allocation6 + $0x20] sm:$0xff] }
  0x18   :  { %143 = vmatpush.msra.mxu1 %v134_v5  ;;  %v124_v17 = vld [vmem:[#allocation6 + $0x18] sm:$0xff]  ;;  %v123_v18 = vld [vmem:[#allocation6 + $0x10] sm:$0xff]  ;;  %v122_v19 = vld [vmem:[#allocation6 + $0x8] sm:$0xff] }
  0x19   :  { %115 = vmatpush.msra.mxu0 %v88_v6  ;;  %v121_v20 = vld [vmem:[#allocation6] sm:$0xff]  ;;  %v177_v21 = vld [vmem:[#allocation7 + $0x78] sm:$0xff]  ;;  %v176_v22 = vld [vmem:[#allocation7 + $0x70] sm:$0xff] }
  0x1a   :  { %210 = vmatmul.msk.f32.vlgmr.msra.gmra.mxu0 %vm96_vm0, %v87_v7  ;;  %144 = vmatpush.msra.mxu1 %v133_v8  ;;  %v175_v23 = vld [vmem:[#allocation7 + $0x68] sm:$0xff]  ;;  %v174_v24 = vld [vmem:[#allocation7 + $0x60] sm:$0xff]  ;;  %v173_v25 = vld [vmem:[#allocation7 + $0x58] sm:$0xff] }
  0x1b   :  { %182 = vmatpush.msra.mxu2 %v177_v21  ;;  %v172_v26 = vld [vmem:[#allocation7 + $0x50] sm:$0xff]  ;;  %v171_v27 = vld [vmem:[#allocation7 + $0x48] sm:$0xff]  ;;  %v170_v28 = vld [vmem:[#allocation7 + $0x40] sm:$0xff] }
  0x1c   :  { %145 = vmatpush.msra.mxu1 %v132_v9  ;;  %v169_v29 = vld [vmem:[#allocation7 + $0x38] sm:$0xff]  ;;  %v168_v30 = vld [vmem:[#allocation7 + $0x30] sm:$0xff]  ;;  %v167_v31 = vld [vmem:[#allocation7 + $0x28] sm:$0xff] }
  0x1d   :  { %183 = vmatpush.msra.mxu2 %v176_v22  ;;  %v166_v32 = vld [vmem:[#allocation7 + $0x20] sm:$0xff]  ;;  %v165_v33 = vld [vmem:[#allocation7 + $0x18] sm:$0xff]  ;;  %v164_v38 = vld [vmem:[#allocation7 + $0x10] sm:$0xff] }
  0x1e   :  { %146 = vmatpush.msra.mxu1 %v131_v10  ;;  %v217_v34 = vld [vmem:[%s394_s2] ss:$0 sm:$0xff]  ;;  %v163_v39 = vld [vmem:[#allocation7 + $0x8] sm:$0xff]  ;;  %v162_v40 = vld [vmem:[#allocation7] sm:$0xff] }
  0x1f   :  { %184 = vmatpush.msra.mxu2 %v175_v23  ;;  %v218_v41 = vld [vmem:[%s396_s4] ss:$0 sm:$0xff] }
  0x20   :  { %147 = vmatpush.msra.mxu1 %v130_v11  ;;  %v219_v45 = vld [vmem:[%s398_s6] ss:$0 sm:$0xff] }
  0x21   :  { %185 = vmatpush.msra.mxu2 %v174_v24 }
  0x22   :  { %148 = vmatpush.msra.mxu1 %v129_v12 }
  0x23   :  { %186 = vmatpush.msra.mxu2 %v173_v25 }
  0x24   :  { %149 = vmatpush.msra.mxu1 %v128_v13 }
  0x25   :  { %187 = vmatpush.msra.mxu2 %v172_v26 }
  0x26   :  { %150 = vmatpush.msra.mxu1 %v127_v14 }
  0x27   :  { %188 = vmatpush.msra.mxu2 %v171_v27 }
  0x28   :  { %151 = vmatpush.msra.mxu1 %v126_v15 }
  0x29   :  { %189 = vmatpush.msra.mxu2 %v170_v28 }
  0x2a   :  { %152 = vmatpush.msra.mxu1 %v125_v16 }
  0x2b   :  { %190 = vmatpush.msra.mxu2 %v169_v29 }
  0x2c   :  { %153 = vmatpush.msra.mxu1 %v124_v17 }
  0x2d   :  { %191 = vmatpush.msra.mxu2 %v168_v30 }
  0x2e   :  { %154 = vmatpush.msra.mxu1 %v123_v18 }
  0x2f   :  { %192 = vmatpush.msra.mxu2 %v167_v31 }
  0x30   :  { %155 = vmatpush.msra.mxu1 %v122_v19 }
  0x31   :  { %193 = vmatpush.msra.mxu2 %v166_v32 }
  0x32   :  { %156 = vmatpush.msra.mxu1 %v121_v20 }
  0x33   :  { %194 = vmatpush.msra.mxu2 %v165_v33 }
  0x35   :  { %195 = vmatpush.msra.mxu2 %v164_v38 }
  0x37   :  { %196 = vmatpush.msra.mxu2 %v163_v39 }
  0x39   :  { %197 = vmatpush.msra.mxu2 %v162_v40 }
  0x97   :  { %v117_v35 = vpop.f32.mrf.mxu0 }
  0x98   :  { %v118_v36 = vadd.f32 %v217_v34, %v117_v35 }
  0x9a   :  { %v120_v37 = vmax.f32 %v118_v36, 0.0 }
  0x9c   :  { %157 = vmatmul.f32.vlgmr.msra.gmra.mxu1 %v120_v37 }
 0x119   :  { %v158_v42 = vpop.f32.mrf.mxu1 }
 0x11a   :  { %v159_v43 = vadd.f32 %v218_v41, %v158_v42 }
 0x11c   :  { %v161_v44 = vmax.f32 %v159_v43, 0.0 }
 0x11e   :  { %198 = vmatmul.f32.vlgmr.msra.gmra.mxu2 %v161_v44 }
 0x1a1   :  { %v199_v46 = vpop.f32.mrf.mxu2 }
 0x1a2   :  { %v200_v47 = vadd.f32 %v219_v45, %v199_v46 }
 0x1a4   :  { %202 = vst [vmem:[%s399_s7] sm:$0xff] %v200_v47 }
 0x1a5   :  { %207 = vsyncpa [#allocation3], 1 }
 0x1a6   :  { %208 = vsyncpa [#allocation5], 1 }
 0x1a7   :  { %209 = vsyncpa [#allocation8], 1 }

</bundles_post_ra>
